<compile_context>
chip_gen: v7x
topology: tpu7x:2x2x1
jax: 0.10.0
libtpu: 0.0.40
codegen_flags: <defaults>
</compile_context>

<pallas_src>
import jax
import jax.numpy as jnp
from jax import lax
from jax.experimental import pallas as pl
from jax.experimental.pallas import tpu as pltpu


def _round_up(a, b):
    return (a + b - 1) // b * b


def _pick_pixel_tile(HW, K_pad, Co_pad, itemsize, budget_bytes=8 * 1024 * 1024):
    """Largest lane-aligned (multiple of 128) divisor of HW whose double-buffered
    working set fits the VMEM budget; falls back to the full extent (always a
    legal block shape) when HW is not 128-divisible."""
    if HW % 128 != 0:
        return HW
    best = 128
    t = 128
    cap = min(HW, 8192)
    while t <= cap:
        if HW % t == 0:
            work = (2 * _round_up(K_pad, 8) * t * itemsize   # patches double buffer
                    + 2 * Co_pad * t * 4)                    # f32 output double buffer
            if work <= budget_bytes:
                best = t
        t += 128
    return best


def affine_adapter_sigmoid(x, weight, bias, *, compute_dtype=jnp.float32):
    """Fused conv3x3(pad=1) + sigmoid/split adapter.

    x: [N, C_in, H, W] (NCHW), weight: [C_out, C_in, 3, 3], bias: [C_out],
    C_out even.  Returns (scale, shift), each [N, C_out//2, H, W] (f32).
    """
    N, Cin, H, W = x.shape
    Cout, wcin, KH, KW = weight.shape
    assert (KH, KW) == (3, 3) and wcin == Cin and Cout % 2 == 0
    Ch = Cout // 2
    HW = H * W
    K9 = 9 * Cin
    K_pad = _round_up(K9, 8)          # sublane-aligned contraction dim
    Co_pad = _round_up(2 * Ch, 8)     # sublane-aligned fused output channels
    itemsize = jnp.dtype(compute_dtype).itemsize
    tn = _pick_pixel_tile(HW, K_pad, Co_pad, itemsize)
    assert HW % tn == 0

    # ---- host-side prep (NCHW-native: pads / slices / stacks only) --------
    # Transposed im2col: patches[n, tap*Cin + ci, y*W + x] = x_pad[n, ci, y+dy, x+dx]
    xp = jnp.pad(x, ((0, 0), (0, 0), (1, 1), (1, 1)))                 # [N,Cin,H+2,W+2]
    taps = [xp[:, :, dy:dy + H, dx:dx + W] for dy in range(3) for dx in range(3)]
    patches = jnp.stack(taps, axis=1).reshape(N, K9, HW)              # [N,9*Cin,H*W]
    patches = jnp.pad(patches, ((0, 0), (0, K_pad - K9), (0, 0)))
    patches = patches.astype(compute_dtype)

    # Fused weights: rows [0,Ch) = even channels (shift), [Ch,2Ch) = odd (scale);
    # columns ordered tap-major then ci to match `patches`.
    w_cat = jnp.concatenate([weight[0::2], weight[1::2]], axis=0)     # [2Ch,Cin,3,3]
    w_fused = w_cat.transpose(0, 2, 3, 1).reshape(2 * Ch, K9)         # [2Ch, 9*Cin]
    w_fused = jnp.pad(w_fused, ((0, Co_pad - 2 * Ch), (0, K_pad - K9)))
    w_fused = w_fused.astype(compute_dtype)

    # Fused bias with the sigmoid branch's +2.0 folded in, plus a resident
    # per-row mask (1 = shift/identity row, 0 = scale/sigmoid row).
    b_cat = jnp.concatenate([bias[0::2], bias[1::2] + 2.0])
    b_cat = jnp.pad(b_cat, (0, Co_pad - 2 * Ch)).reshape(Co_pad, 1).astype(jnp.float32)
    shift_mask = (jnp.arange(Co_pad) < Ch).astype(jnp.int32).reshape(Co_pad, 1)

    def kernel(p_ref, w_ref, b_ref, m_ref, o_ref):
        # One MXU pass per pixel tile: [Co_pad, K_pad] @ [K_pad, tn] -> f32.
        h = jnp.dot(w_ref[...], p_ref[...], preferred_element_type=jnp.float32)
        h = h + b_ref[...]                                    # bias (+2.0 folded)
        # rows [0,Ch): shift (identity); rows [Ch,...): sigmoid branch (EUP).
        o_ref[...] = jnp.where(m_ref[...] > 0, h, jax.nn.sigmoid(h)).astype(o_ref.dtype)

    fused = pl.pallas_call(
        kernel,
        out_shape=jax.ShapeDtypeStruct((N, Co_pad, HW), jnp.float32),
        grid_spec=pltpu.PrefetchScalarGridSpec(
            num_scalar_prefetch=0,
            grid=(N, HW // tn),
            in_specs=[
                pl.BlockSpec((None, K_pad, tn), lambda n, t: (n, 0, t)),  # patches tile
                pl.BlockSpec((Co_pad, K_pad), lambda n, t: (0, 0)),       # resident weights
                pl.BlockSpec((Co_pad, 1), lambda n, t: (0, 0)),           # resident bias
                pl.BlockSpec((Co_pad, 1), lambda n, t: (0, 0)),           # resident row mask
            ],
            out_specs=pl.BlockSpec((None, Co_pad, tn), lambda n, t: (n, 0, t)),
        ),
        compiler_params=pltpu.CompilerParams(
            dimension_semantics=("parallel", "parallel")),
    )(patches, w_fused, b_cat, shift_mask)

    # Epilogue: channel-slice + reshape only (no transposes, no padded lanes
    # ever hit HBM).  Padded rows [2*Ch, Co_pad) are never read.
    shift = fused[:, :Ch, :].reshape(N, Ch, H, W)
    scale = fused[:, Ch:2 * Ch, :].reshape(N, Ch, H, W)
    return scale, shift


def _reference(x, weight, bias):
    """Pure-JAX reference mirroring the PyTorch module."""
    h = jax.lax.conv_general_dilated(
        x, weight, window_strides=(1, 1), padding=((1, 1), (1, 1)),
        dimension_numbers=("NCHW", "OIHW", "NCHW"))
    h = h + bias.reshape(1, -1, 1, 1)
    scale = jax.nn.sigmoid(h[:, 1::2] + 2.0)
    shift = h[:, 0::2]
    return scale, shift


if __name__ == "__main__":
    key = jax.random.PRNGKey(0)
    kx, kw, kb = jax.random.split(key, 3)

    N, Cin, H, W = 2, 4, 16, 16
    Cout = 2 * Cin                                   # adapter requires even C_out

    x = jax.random.normal(kx, (N, Cin, H, W), dtype=jnp.float32)
    weight = jax.random.normal(kw, (Cout, Cin, 3, 3), dtype=jnp.float32) * 0.1
    bias = jax.random.normal(kb, (Cout,), dtype=jnp.float32) * 0.1

    scale, shift = affine_adapter_sigmoid(x, weight, bias)
    jax.block_until_ready((scale, shift))

    scale_ref, shift_ref = _reference(x, weight, bias)
    assert scale.shape == (N, Cin, H, W) and shift.shape == (N, Cin, H, W)
    assert jnp.allclose(scale, scale_ref, atol=1e-5, rtol=1e-5)
    assert jnp.allclose(shift, shift_ref, atol=1e-5, rtol=1e-5)

    print("KERNEL_OK")
</pallas_src>

<mosaic_0001>
module attributes {stable_mosaic.version = 11 : i64} {
  func.func @kernel(%arg0: i32, %arg1: i32, %arg2: memref<1x40x256xf32, #tpu.memory_space<vmem>>, %arg3: memref<8x40xf32, #tpu.memory_space<vmem>>, %arg4: memref<8x1xf32, #tpu.memory_space<vmem>>, %arg5: memref<8x1xi32, #tpu.memory_space<vmem>>, %arg6: memref<1x8x256xf32, #tpu.memory_space<vmem>>) attributes {dimension_semantics = [#tpu.dimension_semantics<parallel>, #tpu.dimension_semantics<parallel>], iteration_bounds = array<i64: 2, 1>, scalar_prefetch = 0 : i64, scratch_operands = 0 : i64, tpu.core_type = #tpu.core_type<tc>, window_params = [{transform_indices = @transform_0, window_bounds = array<i64: 1, 40, 256>}, {pipeline_mode = #tpu.pipeline_mode<synchronous>, transform_indices = @transform_1, window_bounds = array<i64: 8, 40>}, {pipeline_mode = #tpu.pipeline_mode<synchronous>, transform_indices = @transform_2, window_bounds = array<i64: 8, 1>}, {pipeline_mode = #tpu.pipeline_mode<synchronous>, transform_indices = @transform_3, window_bounds = array<i64: 8, 1>}, {transform_indices = @transform_4, window_bounds = array<i64: 1, 8, 256>}]} {
    %c0 = arith.constant 0 : index
    %c0_0 = arith.constant 0 : index
    %0 = vector.load %arg3[%c0, %c0_0] : memref<8x40xf32, #tpu.memory_space<vmem>>, vector<8x40xf32>
    %c0_1 = arith.constant 0 : index
    %c0_2 = arith.constant 0 : index
    %c0_3 = arith.constant 0 : index
    %1 = vector.load %arg2[%c0_1, %c0_2, %c0_3] : memref<1x40x256xf32, #tpu.memory_space<vmem>>, vector<1x40x256xf32>
    %2 = vector.shape_cast %1 : vector<1x40x256xf32> to vector<40x256xf32>
    %cst = arith.constant dense<0.000000e+00> : vector<8x256xf32>
    %3 = tpu.matmul %0, %2, %cst {dimension_numbers = #tpu.dot_dimension_numbers<[1], [0], [0], [1], [0, 0, 1, 1], [], []>} : vector<8x40xf32>, vector<40x256xf32>, vector<8x256xf32> -> vector<8x256xf32>
    %c0_4 = arith.constant 0 : index
    %c0_5 = arith.constant 0 : index
    %4 = vector.load %arg4[%c0_4, %c0_5] : memref<8x1xf32, #tpu.memory_space<vmem>>, vector<8x1xf32>
    %5 = vector.broadcast %4 : vector<8x1xf32> to vector<8x256xf32>
    %6 = arith.addf %3, %5 : vector<8x256xf32>
    %c0_6 = arith.constant 0 : index
    %c0_7 = arith.constant 0 : index
    %7 = vector.load %arg5[%c0_6, %c0_7] : memref<8x1xi32, #tpu.memory_space<vmem>>, vector<8x1xi32>
    %c0_i32 = arith.constant 0 : i32
    %8 = vector.broadcast %c0_i32 : i32 to vector<8x1xi32>
    %9 = arith.cmpi sgt, %7, %8 : vector<8x1xi32>
    %10 = arith.negf %6 : vector<8x256xf32>
    %11 = math.exp %10 : vector<8x256xf32>
    %cst_8 = arith.constant 1.000000e+00 : f32
    %12 = vector.broadcast %cst_8 : f32 to vector<8x256xf32>
    %13 = arith.addf %12, %11 : vector<8x256xf32>
    %14 = arith.divf %12, %13 : vector<8x256xf32>
    %15 = vector.shape_cast %9 : vector<8x1xi1> to vector<8x1xi1>
    %16 = vector.broadcast %15 : vector<8x1xi1> to vector<8x256xi1>
    %17 = arith.select %16, %6, %14 : vector<8x256xi1>, vector<8x256xf32>
    %c0_9 = arith.constant 0 : index
    %c0_10 = arith.constant 0 : index
    %c0_11 = arith.constant 0 : index
    %18 = vector.load %arg6[%c0_9, %c0_10, %c0_11] : memref<1x8x256xf32, #tpu.memory_space<vmem>>, vector<1x8x256xf32>
    %19 = vector.shape_cast %18 : vector<1x8x256xf32> to vector<8x256xf32>
    %20 = vector.shape_cast %17 : vector<8x256xf32> to vector<1x8x256xf32>
    tpu.vector_store %arg6[%c0_9, %c0_10, %c0_11], %20 {strides = array<i32>} : memref<1x8x256xf32, #tpu.memory_space<vmem>>, vector<1x8x256xf32>,
    return
  }
  func.func @transform_0(%arg0: i32, %arg1: i32) -> (i32, i32, i32) {
    %c0_i32 = arith.constant 0 : i32
    %c0_i32_0 = arith.constant 0 : i32
    return %arg0, %c0_i32, %arg1 : i32, i32, i32
  }
  func.func @transform_1(%arg0: i32, %arg1: i32) -> (i32, i32) {
    %c0_i32 = arith.constant 0 : i32
    %c0_i32_0 = arith.constant 0 : i32
    %c0_i32_1 = arith.constant 0 : i32
    return %c0_i32, %c0_i32_0 : i32, i32
  }
  func.func @transform_2(%arg0: i32, %arg1: i32) -> (i32, i32) {
    %c0_i32 = arith.constant 0 : i32
    %c0_i32_0 = arith.constant 0 : i32
    %c0_i32_1 = arith.constant 0 : i32
    return %c0_i32, %c0_i32_0 : i32, i32
  }
  func.func @transform_3(%arg0: i32, %arg1: i32) -> (i32, i32) {
    %c0_i32 = arith.constant 0 : i32
    %c0_i32_0 = arith.constant 0 : i32
    %c0_i32_1 = arith.constant 0 : i32
    return %c0_i32, %c0_i32_0 : i32, i32
  }
  func.func @transform_4(%arg0: i32, %arg1: i32) -> (i32, i32, i32) {
    %c0_i32 = arith.constant 0 : i32
    %c0_i32_0 = arith.constant 0 : i32
    return %arg0, %c0_i32, %arg1 : i32, i32, i32
  }
}

</mosaic_0001>

<bundles_post_ra>
// kernel: tpu_custom_call.1
= control target key start
LH: loop header
LB: loop body
LE: loop exit
PB: predicated region body
PF: predicated region fallthrough
CT: control target
= control target key end

     0   :  { %9 = vsyncpa [#allocation3], 0  ;;  %s882_s0 = inlined_call_operand.hbm [shape: f32[2,40,256], index: 0, kind: input, shape index: {}]   ;;  %s883_s1 = inlined_call_operand.vmem [shape: f32[8,40], index: 1, kind: input, shape index: {}]   ;;  %s884_s2 = inlined_call_operand.vmem [shape: f32[8,1], index: 2, kind: input, shape index: {}]   ;;  %s885_s3 = inlined_call_operand.vmem [shape: s32[8,1], index: 3, kind: input, shape index: {}]   ;;  %s886_s4 = inlined_call_operand.hbm [shape: f32[2,8,256], index: 4, kind: output, shape index: {}]  }
   0x1   :  { %11 = vsyncpa [#allocation3 + $0x1], 0 }
   0x2   :  { %12 = vsyncpa [#allocation4], 0 }
   0x3   :  { %14 = vsyncpa [#allocation4 + $0x1], 0  ;;  %s699_s15 = smov 0   ;;  %s701_s16 = smov 0  }
   0x4   :  { %s703_s17 = smov 0   ;;  %s705_s18 = smov 0  }
   0x5   :  { %s707_s19 = smov 0   ;;  %s709_s20 = smov 0  }
   0x6 LB: > { %s452_s21 = sadd.s32 4294967295, %s666_s20   ;;  %s453_s22 = sadd.s32 4294967294, %s666_s20   ;;  %s666_s20 = sphi %s709_s20, %s20_s20   ;;  %s662_s19 = sphi %s707_s19, %s901_s19   ;;  %s658_s18 = sphi %s705_s18, %s900_s18   ;;  %s654_s17 = sphi %s703_s17, %s899_s17   ;;  %s650_s16 = sphi %s701_s16, %s898_s16   ;;  %s646_s15 = sphi %s699_s15, %s897_s15  }
   0x7   : > { %s32_s23 = sadd.s32 1, %s662_s19  ;;  %s41_s24 = sadd.s32 1, %s654_s17 }
   0x8   : > { %p34_p0 = scmp.ge.s32.totalorder %s32_s23, 2  ;;  %p48_p1 = scmp.ne.s32.totalorder %s654_s17, %s650_s16 }
   0x9   : > { %p49_p2 = scmp.eq.s32.totalorder %s666_s20, 0  ;;  %p54_p3 = scmp.ne.s32.totalorder %s650_s16, %s646_s15 }
   0xa   : > { %s903_s23 = smov (%p34_p0, %s32_s23), 0  ;;  %p55_p5 = scmp.eq.s32.totalorder %s452_s21, 0 }
   0xb   : > { %p740_p4 = por %p49_p2, %p48_p1  ;;  %s36_s26 = ssub.s32 %s662_s19, %s903_s23 }
   0xc   : > { %p143_p6 = scmp.eq.s32.totalorder %s452_s21, 1  ;;  %p39_p7 = scmp.eq.s32.totalorder %s36_s26, 0 }
   0xd   : > { %p746_p8 = por %p55_p5, %p54_p3  ;;  %p149_p10 = scmp.eq.s32.totalorder %s453_s22, 1 }
   0xe   : > { %p750_p9 = por %p143_p6, %p48_p1  ;;  %p491_p13 = scmp.lt.s32.totalorder %s666_s20, 2 }
   0xf   : > { %s755_s29 = scalar_select %p39_p7, %s654_s17, %s41_s24  }
  0x10   : > { %s890_s28 = scalar_select %p750_p9, 1, 0 }
  0x11   : > { %p757_p11 = por %p149_p10, %p54_p3  ;;  %s178_s5 = sand.u32 1, %s654_s17  }
  0x12   : > { %s476_s6 = smul.u32 80, %s178_s5  ;;  %p767_p0 = pnand %p491_p13, %p740_p4 }
  0x13   : > { %s891_s30 = scalar_select %p757_p11, 1, 0 }
  0x14   : > { %s477_s7 = smul.u32 1280, %s662_s19  ;;  %s182_s12 = scalar_lea.vmem [#allocation2], %s476_s6 }
  0x15   : > { %s191_s13 = sshll.u32 %s182_s12, 4  ;;  %s779_s14 = scalar_lea.sflag [#allocation3], %s178_s5  ;;  %s776_s13 = int_to_ptr.vmem [resolvable:$true] %s191_s13 }
  0x16   : > { %s774_s11 = scalar_lea.hbm %s882_s0, %s477_s7  ;;  %p556_p3 = pneg %p767_p0 }
  0x17   : > { %s554_s21 = scalar_lea.hbm %s774_s11, 1280  ;;  %s559_s25 = scalar_lea.hbm %s882_s0, 2560 }
  0x18   : > { %p555_p2 = scmp.ne.s32.totalorder %s774_s11, %s554_s21  ;;  %p560_p6 = scmp.lt.u32.totalorder %s774_s11, %s882_s0 }
  0x19   : > { %p561_p7 = scmp.lt.u32.totalorder %s559_s25, %s554_s21  ;;  %p563_p13 = scmp.lt.u32.totalorder %s554_s21, %s774_s11 }
  0x1a   : > { %p557_p4 = pnand %p556_p3, %p555_p2 }
  0x1b   : > { %p562_p10 = por %p561_p7, %p560_p6 }
  0x1c   : > { %p558_p5 = pneg %p557_p4 }
  0x1d   : > { %p564_p12 = por %p563_p13, %p562_p10 }
  0x1f   : > { %p565_p1 = pnand %p564_p12, %p558_p5 }
  0x21   : > { %568 = shalt.err (!%p565_p1)
}
  0x22   : > { %s569_s5 = scalar_lea.vmem %s776_s13, 1280  ;;  %s668_s7 = smov [#allocation2]  }
  0x23   : > { %p570_p2 = scmp.ne.s32.totalorder %s776_s13, %s569_s5  ;;  %s574_s9 = sshll.u32 %s668_s7, 4  ;;  %s575_s9 = int_to_ptr.vmem [resolvable:$false] %s574_s9 }
  0x24   : > { %s576_s10 = scalar_lea.vmem %s575_s9, 2560  ;;  %p577_p9 = scmp.lt.s32.totalorder %s776_s13, %s575_s9 }
  0x25   : > { %p572_p4 = pnand %p570_p2, %p556_p3  ;;  %p578_p6 = scmp.lt.s32.totalorder %s576_s10, %s569_s5 }
  0x27   : > { %p573_p11 = pneg %p572_p4  ;;  %p579_p7 = por %p578_p6, %p577_p9 }
  0x29   : > { %p580_p10 = pnand %p579_p7, %p573_p11 }
  0x2b   : > { %583 = shalt.err (!%p580_p10)
}
  0x2c   : > { %s669_s12 = smov 256   ;;  %s670_s21 = smov 16  }
  0x2d   : > { %486 = dma.hbm_to_vmem [thread:$0]  (!%p767_p0), %s774_s11, 1280, %s776_s13, %s779_s14, %s669_s12, %s669_s12, %s670_s21  }
  0x2e   : > { %p199_p12 = scmp.lt.s32.totalorder %s666_s20, 3  ;;  %p893_p1 = scmp.ge.s32.totalorder %s666_s20, 1 }
  0x30   : > { %p200_p3 = pnand %p893_p1, %p199_p12 }
  0x31   : > { %s811_s22 = sand.u32 (!%p200_p3), 1, %s650_s16  }
  0x32   : > { %203 = sbr.rel (%p200_p3) target bundleno = 327 (0x147), region = 36  ;;  %s206_s25 = scalar_lea.sflag (!%p200_p3), [#allocation3], %s811_s22 }
  0x33   : > { %s478_s24 = smul.u32 (!%p200_p3), 80, %s811_s22 }
  0x35   : > { %s209_s26 = scalar_lea.vmem (!%p200_p3), [#allocation2], %s478_s24 }
  0x39   : > { %637 = dma.done.wait (%p746_p8), %s206_s25, 1280  }
  0x3a   : > { %639 = vsyncadd (%p746_p8), %s206_s25, 4294966016  ;;  %v671_v0 = vmov 0.0   ;;  %v672_v1 = vmov 0   ;;  %v238_v2 = vld [vmem:[%s209_s26 + $0x8] sm:$0xff]  ;;  %v240_v3 = vld [vmem:[%s209_s26 + $0x18] sm:$0xff]  ;;  %vm253_vm1 = vcmask 326656  }
  0x3b   : > { %321 = vmatprep.mubr.f32.mxu0 %v671_v0  ;;  %545 = vset.pattern.permute.xlu0 %v672_v1  ;;  %v237_v4 = vld [vmem:[%s209_s26] sm:$0xff]  ;;  %v468_v5 = vpack.c.bf16 %v240_v3, %v238_v2  ;;  %v239_v6 = vld [vmem:[%s209_s26 + $0x10] sm:$0xff]  ;;  %v242_v7 = vld [vmem:[%s209_s26 + $0x28] sm:$0xff]  ;;  %s458_s5 = sshll.u32 %s811_s22, 4  ;;  %s467_s7 = sshll.u32 %s658_s18, 8 }
  0x3c   : > { %v244_v8 = vld [vmem:[%s209_s26 + $0x38] sm:$0xff]  ;;  %v470_v9 = vpack.c.bf16 %v239_v6, %v237_v4  ;;  %v241_v11 = vld [vmem:[%s209_s26 + $0x20] sm:$0xff]  ;;  %v243_v12 = vld [vmem:[%s209_s26 + $0x30] sm:$0xff]  ;;  %s233_s9 = scalar_lea.vmem [#allocation5], %s458_s5  ;;  %s833_s24 = scalar_lea.hbm %s886_s4, %s467_s7 }
  0x3d   : > { %v472_v10 = vpack.c.bf16 %v244_v8, %v242_v7  ;;  %469 = vmatprep.subr.bf16.mxu0 %v468_v5  ;;  %v328_v13 = vld [vmem:[%s885_s3] sm:$0xff]  ;;  %v474_v14 = vpack.c.bf16 %v243_v12, %v241_v11  ;;  %v246_v16 = vld [vmem:[%s209_s26 + $0x48] sm:$0xff]  ;;  %s368_s10 = sshll.u32 %s233_s9, 4  ;;  %s352_s18 = scalar_lea.sflag [#allocation4], %s811_s22  ;;  %s835_s10 = int_to_ptr.vmem [resolvable:$true] %s368_s10 }
  0x3e   : > { %471 = vmatpush1.bf16.msra.mxu0 %v470_v9  ;;  %vm329_vm0 = vcmp.gt.s32.totalorder %v328_v13, 0  ;;  %v247_v15 = vld [vmem:[%s884_s2] sm:$0xff]  ;;  %s584_s25 = scalar_lea.vmem %s835_s10, 256  ;;  %p894_p9 = scmp.ne.s32.totalorder %s890_s28, 0 }
  0x3f   : > { %473 = vmatprep.subr.bf16.mxu0 %v472_v10  ;;  %250 = vperm.xlu0 %545, %v247_v15   ;;  %v342_v17 = vsel %vm329_vm0, 1, %v672_v1  ;;  %v245_v18 = vld [vmem:[%s209_s26 + $0x40] sm:$0xff]  ;;  %p585_p8 = scmp.ne.s32.totalorder %s835_s10, %s584_s25  ;;  %s673_s26 = smov [#allocation5]  }
  0x40   : > { %v236_v19 = vld [vmem:[%s883_s1] sm:$0xff]  ;;  %s588_s8 = sshll.u32 %s673_s26, 4  ;;  %s589_s8 = int_to_ptr.vmem [resolvable:$false] %s588_s8 }
  0x41   : > { %p586_p11 = pnand %p585_p8, %p894_p9  ;;  %s590_s11 = scalar_lea.vmem %s589_s8, 512 }
  0x42   : > { %475 = vmatpush1.bf16.msra.mxu0 %v474_v14  ;;  %p591_p5 = scmp.lt.s32.totalorder %s835_s10, %s589_s8  ;;  %p592_p13 = scmp.lt.s32.totalorder %s590_s11, %s584_s25 }
  0x43   : > { %265 = vmatprep.subr.mxu0 %v246_v16  ;;  %344 = vperm.xlu0 %545, %v342_v17   ;;  %p587_p0 = pneg %p586_p11 }
  0x44   : > { %p593_p2 = por %p592_p13, %p591_p5 }
  0x46   : > { %266 = vmatpush1.msra.mxu0 %v245_v18  ;;  %p594_p4 = pnand %p593_p2, %p587_p0 }
  0x47   : > { %459 = vmatmul.mubr.msk.f32.vlgmr.msra.gmra.mrb[0].mxu0 %vm253_vm1, %v236_v19 }
  0xbe   : > { %v251_v20 = vpop.permute.xlu0 %250 }
  0xc2   : > { %v345_v31 = vpop.permute.xlu0 %344 }
  0xc3   : > { %vm346_vm2 = vcmp.eq.s32.totalorder %v345_v31, 1 }
 0x11a   : > { %v323_v21 = vpop.f32.mrb[0].mxu0 }
 0x11b   : > { %v324_v22 = vadd.f32 %v323_v21, %v251_v20  ;;  %v325_v23 = vpop.f32.mrb[1].mxu0 }
 0x11c   : > { %v326_v24 = vadd.f32 %v325_v23, %v251_v20 }
 0x11d   : > { %v460_v25 = vmul.f32 -1.442695, %v324_v22 }
 0x11e   : > { %v461_v26 = vmul.f32 -1.442695, %v326_v24 }
 0x11f   : > { %546 = vpow2.f32 %v460_v25 }
 0x120   : > { %548 = vpow2.f32 %v461_v26 }
 0x129   : > { %v547_v27 = vpop.eup %546 }
 0x12a   : > { %v549_v28 = vpop.eup %548  ;;  %v336_v29 = vadd.f32 1.0, %v547_v27 }
 0x12b   : > { %v337_v30 = vadd.f32 1.0, %v549_v28 }
 0x12c   : > { %550 = vrcp.f32 %v336_v29 }
 0x12d   : > { %552 = vrcp.f32 %v337_v30 }
 0x136   : > { %v551_v32 = vpop.eup %550 }
 0x137   : > { %v553_v33 = vpop.eup %552  ;;  %v347_v34 = vsel %vm346_vm2, %v324_v22, %v551_v32 }
 0x138   : > { %349 = vst [vmem:[%s233_s9] sm:$0xff] %v347_v34  ;;  %v348_v35 = vsel %vm346_vm2, %v326_v24, %v553_v33 }
 0x139   : > { %350 = vst [vmem:[%s233_s9 + $0x8] sm:$0xff] %v348_v35 }
 0x13a   : > { %597 = shalt.err (!%p594_p4)
}
 0x13b   : > { %s598_s22 = scalar_lea.hbm %s833_s24, 256  ;;  %s602_s14 = scalar_lea.hbm %s886_s4, 512 }
 0x13c   : > { %p599_p6 = scmp.ne.s32.totalorder %s833_s24, %s598_s22  ;;  %p603_p12 = scmp.lt.u32.totalorder %s833_s24, %s886_s4 }
 0x13d   : > { %p604_p1 = scmp.lt.u32.totalorder %s602_s14, %s598_s22  ;;  %p606_p8 = scmp.lt.u32.totalorder %s598_s22, %s833_s24 }
 0x13e   : > { %p600_p7 = pnand %p599_p6, %p894_p9 }
 0x13f   : > { %p605_p3 = por %p604_p1, %p603_p12 }
 0x140   : > { %p601_p10 = pneg %p600_p7 }
 0x141   : > { %p607_p11 = por %p606_p8, %p605_p3 }
 0x143   : > { %p608_p0 = pnand %p607_p11, %p601_p10 }
 0x145   : > { %611 = shalt.err (!%p608_p0)
}
 0x146   : > { %481 = dma.vmem_to_hbm [thread:$0]  (%p894_p9), %s835_s10, 256, %s833_s24, %s352_s18  }
 0x147 PF: > { %s380_s7 = sand.u32 1, %s646_s15   ;;  %p895_p5 = scmp.ne.s32.totalorder %s891_s30, 0 }
 0x148   : > { %p896_p13 = scmp.ge.s32.totalorder %s666_s20, 2  ;;  %s381_s9 = scalar_lea.sflag [#allocation4], %s380_s7 }
 0x14a   : > { %p488_p2 = pnand %p896_p13, %p895_p5 }
 0x14c   : > { %641 = dma.done.wait (!%p488_p2), %s381_s9, 256  }
 0x14d   : > { %643 = vsyncadd (!%p488_p2), %s381_s9, 4294967040  ;;  %s20_s20 = sadd.s32 1, %s666_s20   ;;  %s897_s15 = smov %s650_s16 }
 0x14e   : > { %p17_p4 = scmp.ge.s32.totalorder %s20_s20, 4   ;;  %s898_s16 = smov %s654_s17 }
 0x14f   : > { %s899_s17 = smov %s755_s29  ;;  %s900_s18 = smov %s662_s19 }
 0x150   : > { %s901_s19 = smov %s903_s23  ;;  %19 = sbr.rel (!%p17_p4) target bundleno = 6 (0x6), region = 81 }
 0x157   :  { %386 = vsyncpa [#allocation3], 1 }
 0x158   :  { %388 = vsyncpa [#allocation3 + $0x1], 1 }
 0x159   :  { %389 = vsyncpa [#allocation4], 1 }
 0x15a   :  { %391 = vsyncpa [#allocation4 + $0x1], 1 }

</bundles_post_ra>
